<compile_context>
chip_gen: v5e
topology: v5e:2x2
jax: 0.10.0
libtpu: 0.0.40
codegen_flags: <defaults>
</compile_context>

<pallas_src>
import jax
import jax.numpy as jnp
from jax.experimental import pallas as pl
from jax.experimental.pallas import tpu as pltpu

_LANE = 128
_SUBLANE = 8


def _round_up(n: int, m: int) -> int:
    return ((n + m - 1) // m) * m


def _pick_tile(total: int, cap: int, align: int) -> int:
    """Largest multiple of `align` that divides `total` and is <= cap."""
    cap = max(align, (cap // align) * align)
    best = align
    t = align
    while t <= min(total, cap):
        if total % t == 0:
            best = t
        t += align
    return best


def _pick_batch_tile(B: int, batch_tile: int) -> int:
    if B < _LANE:
        return min(_round_up(B, _SUBLANE), max(_SUBLANE, _round_up(batch_tile, _SUBLANE)))
    # MXU-aligned tile with minimal padding overshoot.
    best, best_pad = _LANE, _round_up(B, _LANE) - B
    for cand in (256, 512):
        if cand <= batch_tile:
            pad = _round_up(B, cand) - B
            if pad <= best_pad:
                best, best_pad = cand, pad
    return best


def mlp_kernel(x_ref, w1_ref, b1_ref, w2_ref, b2_ref, o_ref, acc_ref):
    """grid = (batch tiles, out-feature tiles, hidden reduction steps)."""
    h = pl.program_id(2)

    @pl.when(h == 0)
    def _():
        acc_ref[...] = jnp.zeros_like(acc_ref)

    # linear1 block: bf16 MXU, f32 accumulate; bias add + ReLU in f32 on VPU.
    x = x_ref[...].astype(jnp.bfloat16)
    hid = jnp.dot(x, w1_ref[...], preferred_element_type=jnp.float32)
    hid = jnp.maximum(hid + b1_ref[...], 0.0)
    # linear2 partial sum over this hidden block.
    acc_ref[...] += jnp.dot(hid.astype(jnp.bfloat16), w2_ref[...],
                            preferred_element_type=jnp.float32)

    @pl.when(h == pl.num_programs(2) - 1)
    def _():
        o_ref[...] = (acc_ref[...] + b2_ref[...]).astype(o_ref.dtype)


def prepare_mlp_params(w1, b1, w2, b2):
    """Pad feature dims to lane multiples and cast weights to bf16 ONCE.

    w1: (Cin, H), b1: (H,), w2: (H, Cout), b2: (Cout,) — the transposed
    (in, out) layout of nn.Linear's (out, in) weights.
    """
    Cin, H = w1.shape
    Cout = w2.shape[1]
    H_pad = _round_up(H, _LANE)
    C_pad = _round_up(Cout, _LANE)
    f32, bf16 = jnp.float32, jnp.bfloat16
    # Zero padding is neutral: relu(x@0 + 0) = 0 and padded w2 rows are zero.
    w1_p = jnp.zeros((Cin, H_pad), bf16).at[:, :H].set(w1.astype(bf16))
    b1_p = jnp.zeros((1, H_pad), f32).at[0, :H].set(b1.astype(f32))
    w2_p = jnp.zeros((H_pad, C_pad), bf16).at[:H, :Cout].set(w2.astype(bf16))
    b2_p = jnp.zeros((1, C_pad), f32).at[0, :Cout].set(b2.astype(f32))
    return dict(w1=w1_p, b1=b1_p, w2=w2_p, b2=b2_p,
                in_features=Cin, hidden=H, out_features=Cout)


def mlp_forward(x, params, *, batch_tile: int = 128, hidden_tile: int = 512,
                n_tile: int = 2048, out_dtype=None):
    """x: (B, Cin); params from prepare_mlp_params. Returns (B, Cout)."""
    w1_p, b1_p, w2_p, b2_p = params["w1"], params["b1"], params["w2"], params["b2"]
    B, Cin = x.shape
    assert Cin == params["in_features"]
    H_pad = w1_p.shape[1]
    C_pad = w2_p.shape[1]
    Cout = params["out_features"]
    out_dtype = x.dtype if out_dtype is None else out_dtype

    TM = _pick_batch_tile(B, batch_tile)
    TH = _pick_tile(H_pad, hidden_tile, _LANE)
    TN = _pick_tile(C_pad, n_tile, _LANE)
    B_pad = _round_up(B, TM)

    # Fast path: no HBM pad/copy round trip when batch already tiles evenly.
    if B_pad == B:
        x_in = x
    else:
        x_in = jnp.zeros((B_pad, Cin), x.dtype).at[:B, :].set(x)

    x_bytes = jnp.dtype(x.dtype).itemsize
    o_bytes = jnp.dtype(out_dtype).itemsize
    footprint = (
        2 * TM * Cin * x_bytes        # streamed x tile (double-buffered)
        + 2 * Cin * TH * 2            # w1 block (bf16, double-buffered)
        + 2 * TH * 4                  # b1 block
        + 2 * TH * TN * 2             # w2 block (bf16, double-buffered)
        + 2 * TN * 4                  # b2 block
        + 2 * TM * TN * o_bytes       # output tile
        + TM * TN * 4                 # f32 accumulator scratch
        + TM * TH * (4 + 2)           # hidden intermediate (f32 + bf16 copy)
    )
    # Explicit scoped-VMEM limit: sized to footprint, ceiling safe on v7x (64 MiB).
    vmem_limit = int(min(max(footprint * 2, 32 << 20), 56 << 20))

    grid = (B_pad // TM, C_pad // TN, H_pad // TH)

    out_padded = pl.pallas_call(
        mlp_kernel,
        out_shape=jax.ShapeDtypeStruct((B_pad, C_pad), out_dtype),
        grid=grid,
        in_specs=[
            pl.BlockSpec((TM, Cin), lambda i, n, h: (i, 0)),   # x tile
            pl.BlockSpec((Cin, TH), lambda i, n, h: (0, h)),   # w1 block
            pl.BlockSpec((1, TH), lambda i, n, h: (0, h)),     # b1 block
            pl.BlockSpec((TH, TN), lambda i, n, h: (h, n)),    # w2 block
            pl.BlockSpec((1, TN), lambda i, n, h: (0, n)),     # b2 block
        ],
        out_specs=pl.BlockSpec((TM, TN), lambda i, n, h: (i, n)),
        scratch_shapes=[pltpu.VMEM((TM, TN), jnp.float32)],
        compiler_params=pltpu.CompilerParams(
            dimension_semantics=("parallel", "parallel", "arbitrary"),
            vmem_limit_bytes=vmem_limit,
        ),
    )(x_in, w1_p, b1_p, w2_p, b2_p)

    return out_padded[:B, :Cout]


def _ref_forward(x, w1, b1, w2, b2, bf16_faithful):
    if bf16_faithful:
        xb = x.astype(jnp.bfloat16).astype(jnp.float32)
        w1b = w1.astype(jnp.bfloat16).astype(jnp.float32)
        w2b = w2.astype(jnp.bfloat16).astype(jnp.float32)
        h = jnp.maximum(xb @ w1b + b1, 0.0)
        h = h.astype(jnp.bfloat16).astype(jnp.float32)
        return h @ w2b + b2
    return jnp.maximum(x @ w1 + b1, 0.0) @ w2 + b2


def _run_case(key, batch, in_channels, out_channels, **fwd_kwargs):
    hidden = 2 * out_channels
    kx, kw1, kb1, kw2, kb2 = jax.random.split(key, 5)
    bound1 = 1.0 / (in_channels ** 0.5)
    bound2 = 1.0 / (hidden ** 0.5)
    x = jax.random.normal(kx, (batch, in_channels), dtype=jnp.float32)
    # nn.Linear stores weight as (out, in); we keep the transposed (in, out).
    w1 = jax.random.uniform(kw1, (in_channels, hidden),
                            minval=-bound1, maxval=bound1, dtype=jnp.float32)
    b1 = jax.random.uniform(kb1, (hidden,),
                            minval=-bound1, maxval=bound1, dtype=jnp.float32)
    w2 = jax.random.uniform(kw2, (hidden, out_channels),
                            minval=-bound2, maxval=bound2, dtype=jnp.float32)
    b2 = jax.random.uniform(kb2, (out_channels,),
                            minval=-bound2, maxval=bound2, dtype=jnp.float32)

    params = prepare_mlp_params(w1, b1, w2, b2)   # done once, reused per call
    out = jax.block_until_ready(mlp_forward(x, params, **fwd_kwargs))
    assert out.shape == (batch, out_channels)

    # Reference matching the kernel's arithmetic (bf16 MXU inputs, f32 accum).
    ref_bf16 = _ref_forward(x, w1, b1, w2, b2, True)
    assert jnp.allclose(out, ref_bf16, atol=2e-3, rtol=2e-3)
    # Coarse check against the pure-f32 PyTorch-equivalent forward.
    ref_f32 = _ref_forward(x, w1, b1, w2, b2, False)
    assert jnp.allclose(out, ref_f32, atol=6e-2, rtol=6e-2)


if __name__ == "__main__":
    key = jax.random.PRNGKey(0)
    k1, k2 = jax.random.split(key)

    # Case 1: shapes matching MLP(32, 16) (hidden=32) — single tile per axis.
    _run_case(k1, batch=8, in_channels=32, out_channels=16)

    # Case 2: exercises the full grid — 2 batch tiles with batch padding,
    # 3 hidden-reduction steps (accumulator init/finalize), 2 output tiles.
    _run_case(k2, batch=13, in_channels=32, out_channels=160,
              batch_tile=8, hidden_tile=128, n_tile=128)

    print("KERNEL_OK")
</pallas_src>

<mosaic_0001>
module attributes {stable_mosaic.version = 11 : i64} {
  func.func @mlp_kernel(%arg0: i32, %arg1: i32, %arg2: i32, %arg3: memref<8x32xf32, #tpu.memory_space<vmem>>, %arg4: memref<32x128xbf16, #tpu.memory_space<vmem>>, %arg5: memref<1x128xf32, #tpu.memory_space<vmem>>, %arg6: memref<128x128xbf16, #tpu.memory_space<vmem>>, %arg7: memref<1x128xf32, #tpu.memory_space<vmem>>, %arg8: memref<8x128xf32, #tpu.memory_space<vmem>>, %arg9: memref<8x128xf32, #tpu.memory_space<vmem>>) attributes {dimension_semantics = [#tpu.dimension_semantics<parallel>, #tpu.dimension_semantics<parallel>, #tpu.dimension_semantics<arbitrary>], iteration_bounds = array<i64: 1, 1, 1>, scalar_prefetch = 0 : i64, scratch_operands = 1 : i64, tpu.core_type = #tpu.core_type<tc>, window_params = [{transform_indices = @transform_0, window_bounds = array<i64: 8, 32>}, {transform_indices = @transform_1, window_bounds = array<i64: 32, 128>}, {transform_indices = @transform_2, window_bounds = array<i64: 1, 128>}, {transform_indices = @transform_3, window_bounds = array<i64: 128, 128>}, {transform_indices = @transform_4, window_bounds = array<i64: 1, 128>}, {transform_indices = @transform_5, window_bounds = array<i64: 8, 128>}]} {
    %c0_i32 = arith.constant 0 : i32
    %0 = arith.cmpi eq, %arg2, %c0_i32 : i32
    %1 = arith.extui %0 : i1 to i32
    %c0_i32_0 = arith.constant 0 : i32
    %2 = arith.cmpi ne, %1, %c0_i32_0 : i32
    scf.if %2 {
      %cst_16 = arith.constant 0.000000e+00 : f32
      %21 = vector.broadcast %cst_16 : f32 to vector<8x128xf32>
      %c0_17 = arith.constant 0 : index
      %c0_18 = arith.constant 0 : index
      %22 = vector.load %arg9[%c0_17, %c0_18] : memref<8x128xf32, #tpu.memory_space<vmem>>, vector<8x128xf32>
      tpu.vector_store %arg9[%c0_17, %c0_18], %21 {strides = array<i32>} : memref<8x128xf32, #tpu.memory_space<vmem>>, vector<8x128xf32>,
    } else {
    }
    %c0 = arith.constant 0 : index
    %c0_1 = arith.constant 0 : index
    %3 = vector.load %arg3[%c0, %c0_1] : memref<8x32xf32, #tpu.memory_space<vmem>>, vector<8x32xf32>
    %4 = arith.truncf %3 : vector<8x32xf32> to vector<8x32xbf16>
    %c0_2 = arith.constant 0 : index
    %c0_3 = arith.constant 0 : index
    %5 = vector.load %arg4[%c0_2, %c0_3] : memref<32x128xbf16, #tpu.memory_space<vmem>>, vector<32x128xbf16>
    %cst = arith.constant dense<0.000000e+00> : vector<8x128xf32>
    %6 = tpu.matmul %4, %5, %cst {dimension_numbers = #tpu.dot_dimension_numbers<[1], [0], [0], [1], [0, 0, 1, 1], [], []>} : vector<8x32xbf16>, vector<32x128xbf16>, vector<8x128xf32> -> vector<8x128xf32>
    %c0_4 = arith.constant 0 : index
    %c0_5 = arith.constant 0 : index
    %7 = vector.load %arg5[%c0_4, %c0_5] : memref<1x128xf32, #tpu.memory_space<vmem>>, vector<1x128xf32>
    %8 = vector.broadcast %7 : vector<1x128xf32> to vector<8x128xf32>
    %9 = arith.addf %6, %8 : vector<8x128xf32>
    %cst_6 = arith.constant 0.000000e+00 : f32
    %10 = vector.broadcast %cst_6 : f32 to vector<8x128xf32>
    %11 = arith.maximumf %9, %10 : vector<8x128xf32>
    %c0_7 = arith.constant 0 : index
    %c0_8 = arith.constant 0 : index
    %12 = vector.load %arg9[%c0_7, %c0_8] : memref<8x128xf32, #tpu.memory_space<vmem>>, vector<8x128xf32>
    %13 = arith.truncf %11 : vector<8x128xf32> to vector<8x128xbf16>
    %c0_9 = arith.constant 0 : index
    %c0_10 = arith.constant 0 : index
    %14 = vector.load %arg6[%c0_9, %c0_10] : memref<128x128xbf16, #tpu.memory_space<vmem>>, vector<128x128xbf16>
    %cst_11 = arith.constant dense<0.000000e+00> : vector<8x128xf32>
    %15 = tpu.matmul %13, %14, %cst_11 {dimension_numbers = #tpu.dot_dimension_numbers<[1], [0], [0], [1], [0, 0, 1, 1], [], []>} : vector<8x128xbf16>, vector<128x128xbf16>, vector<8x128xf32> -> vector<8x128xf32>
    %16 = arith.addf %12, %15 : vector<8x128xf32>
    %c0_12 = arith.constant 0 : index
    %c0_13 = arith.constant 0 : index
    %17 = vector.load %arg9[%c0_12, %c0_13] : memref<8x128xf32, #tpu.memory_space<vmem>>, vector<8x128xf32>
    tpu.vector_store %arg9[%c0_12, %c0_13], %16 {strides = array<i32>} : memref<8x128xf32, #tpu.memory_space<vmem>>, vector<8x128xf32>,
    %c0_i32_14 = arith.constant 0 : i32
    %18 = arith.cmpi eq, %arg2, %c0_i32_14 : i32
    %19 = arith.extui %18 : i1 to i32
    %c0_i32_15 = arith.constant 0 : i32
    %20 = arith.cmpi ne, %19, %c0_i32_15 : i32
    scf.if %20 {
      %c0_16 = arith.constant 0 : index
      %c0_17 = arith.constant 0 : index
      %21 = vector.load %arg9[%c0_16, %c0_17] : memref<8x128xf32, #tpu.memory_space<vmem>>, vector<8x128xf32>
      %c0_18 = arith.constant 0 : index
      %c0_19 = arith.constant 0 : index
      %22 = vector.load %arg7[%c0_18, %c0_19] : memref<1x128xf32, #tpu.memory_space<vmem>>, vector<1x128xf32>
      %23 = vector.broadcast %22 : vector<1x128xf32> to vector<8x128xf32>
      %24 = arith.addf %21, %23 : vector<8x128xf32>
      %c0_20 = arith.constant 0 : index
      %c0_21 = arith.constant 0 : index
      %25 = vector.load %arg8[%c0_20, %c0_21] : memref<8x128xf32, #tpu.memory_space<vmem>>, vector<8x128xf32>
      tpu.vector_store %arg8[%c0_20, %c0_21], %24 {strides = array<i32>} : memref<8x128xf32, #tpu.memory_space<vmem>>, vector<8x128xf32>,
    } else {
    }
    return
  }
  func.func @transform_0(%arg0: i32, %arg1: i32, %arg2: i32) -> (i32, i32) {
    %c0_i32 = arith.constant 0 : i32
    %c0_i32_0 = arith.constant 0 : i32
    return %arg0, %c0_i32 : i32, i32
  }
  func.func @transform_1(%arg0: i32, %arg1: i32, %arg2: i32) -> (i32, i32) {
    %c0_i32 = arith.constant 0 : i32
    %c0_i32_0 = arith.constant 0 : i32
    return %c0_i32, %arg2 : i32, i32
  }
  func.func @transform_2(%arg0: i32, %arg1: i32, %arg2: i32) -> (i32, i32) {
    %c0_i32 = arith.constant 0 : i32
    %c0_i32_0 = arith.constant 0 : i32
    return %c0_i32, %arg2 : i32, i32
  }
  func.func @transform_3(%arg0: i32, %arg1: i32, %arg2: i32) -> (i32, i32) {
    %c0_i32 = arith.constant 0 : i32
    return %arg2, %arg1 : i32, i32
  }
  func.func @transform_4(%arg0: i32, %arg1: i32, %arg2: i32) -> (i32, i32) {
    %c0_i32 = arith.constant 0 : i32
    %c0_i32_0 = arith.constant 0 : i32
    return %c0_i32, %arg1 : i32, i32
  }
  func.func @transform_5(%arg0: i32, %arg1: i32, %arg2: i32) -> (i32, i32) {
    %c0_i32 = arith.constant 0 : i32
    return %arg0, %arg1 : i32, i32
  }
}

</mosaic_0001>

<bundles_post_ra>
// kernel: tpu_custom_call.1
= control target key start
LH: loop header
LB: loop body
LE: loop exit
PB: predicated region body
PF: predicated region fallthrough
CT: control target
= control target key end

     0   :  { %10 = vsyncpa [#allocation4], 0  ;;  %s436_s0 = inlined_call_operand.hbm [shape: f32[8,32], index: 0, kind: input, shape index: {}]   ;;  %s437_s1 = inlined_call_operand.hbm [shape: bf16[32,128], index: 1, kind: input, shape index: {}]   ;;  %s438_s2 = inlined_call_operand.vmem [shape: f32[1,128], index: 2, kind: input, shape index: {}]   ;;  %s439_s3 = inlined_call_operand.hbm [shape: bf16[128,128], index: 3, kind: input, shape index: {}]   ;;  %s440_s4 = inlined_call_operand.vmem [shape: f32[1,128], index: 4, kind: input, shape index: {}]   ;;  %s441_s5 = inlined_call_operand.hbm [shape: f32[8,128], index: 5, kind: output, shape index: {}]  }
   0x1   :  { %11 = vsyncpa [#allocation7], 0  ;;  %s28_s20 = sshll.u32 %s437_s1, 4  ;;  %s29_s20 = int_to_ptr.hbm [resolvable:$true] %s28_s20 }
   0x2   :  { %12 = vsyncpa [#allocation5], 0  ;;  %s382_s21 = smov [#allocation6]   ;;  %s18_s25 = sshll.u32 %s436_s0, 4  ;;  %s19_s25 = int_to_ptr.hbm [resolvable:$true] %s18_s25 }
   0x3   :  { %s30_s22 = sshll.u32 %s382_s21, 4  ;;  %s383_s26 = smov 64   ;;  %s31_s22 = int_to_ptr.vmem [resolvable:$true] %s30_s22 }
   0x4   :  { %s384_s27 = smov 4   ;;  %s385_s28 = smov [#allocation3]  }
   0x5   :  { %36 = dma.hbm_to_vmem [thread:$0]  %s29_s20, 256, %s31_s22, [#allocation7], %s383_s26, %s383_s26, %s384_s27  }
   0x6   :  { %s20_s29 = sshll.u32 %s385_s28, 4  ;;  %s43_s7 = sshll.u32 %s439_s3, 4  ;;  %s21_s29 = int_to_ptr.vmem [resolvable:$true] %s20_s29  ;;  %s44_s7 = int_to_ptr.hbm [resolvable:$true] %s43_s7 }
   0x7   :  { %23 = dma.hbm_to_vmem [thread:$0]  %s19_s25, 128, %s21_s29, [#allocation4]  }
   0x8   :  { %s386_s1 = smov [#allocation8]  }
   0x9   :  { %s45_s8 = sshll.u32 %s386_s1, 4  ;;  %s46_s8 = int_to_ptr.vmem [resolvable:$true] %s45_s8 }
   0xa   :  { %51 = dma.hbm_to_vmem [thread:$0]  %s44_s7, 1024, %s46_s8, [#allocation7], %s383_s26, %s383_s26, %s384_s27  }
   0xb   :  { %376 = dma.done.wait [#allocation4], 128  }
   0xc   :  { %377 = vsyncadd [#allocation4], 4294967168 }
   0xd   :  { %378 = dma.done.wait [#allocation7], 1280  }
   0xe   :  { %379 = vsyncadd [#allocation7], 4294966016  ;;  %v263_v0 = vld [vmem:[#allocation6 + $0x8] sm:$0xff]  ;;  %v262_v2 = vld [vmem:[#allocation6] sm:$0xff]  ;;  %vm94_vm0 = vcmask 261120   ;;  %s387_s11 = smov [#allocation9]  }
   0xf   :  { %v271_v1 = vld [vmem:[#allocation8 + $0x38] sm:$0xff]  ;;  %104 = vmatpush.bf16.msra.mxu0 %v263_v0  ;;  %v72_v3 = vld [vmem:[#allocation3] sm:$0xff]  ;;  %v270_v4 = vld [vmem:[#allocation8 + $0x30] sm:$0xff]  ;;  %s208_s12 = sshll.u32 %s387_s11, 4  ;;  %s210_s15 = sshll.u32 %s441_s5, 4  ;;  %s209_s12 = int_to_ptr.vmem [resolvable:$true] %s208_s12  ;;  %s211_s15 = int_to_ptr.hbm [resolvable:$true] %s210_s15 }
  0x10   :  { %178 = vmatpush.bf16.msra.mxu1 %v271_v1  ;;  %v73_v5 = vpack.c.bf16 %v72_v3, %v72_v3  ;;  %v269_v6 = vld [vmem:[#allocation8 + $0x28] sm:$0xff]  ;;  %v268_v7 = vld [vmem:[#allocation8 + $0x20] sm:$0xff]  ;;  %v267_v8 = vld [vmem:[#allocation8 + $0x18] sm:$0xff] }
  0x11   :  { %v266_v9 = vld [vmem:[#allocation8 + $0x10] sm:$0xff]  ;;  %v265_v10 = vld [vmem:[#allocation8 + $0x8] sm:$0xff]  ;;  %v264_v11 = vld [vmem:[#allocation8] sm:$0xff] }
  0x12   :  { %v278_v12 = vld [vmem:[%s438_s2] ss:$0 sm:$0xff] }
  0x13   :  { %105 = vmatpush.bf16.msra.mxu0 %v262_v2  ;;  %v279_v18 = vld [vmem:[%s440_s4] ss:$0 sm:$0xff] }
  0x14   :  { %179 = vmatpush.bf16.msra.mxu1 %v270_v4 }
  0x16   :  { %229 = vmatmul.msk.bf16.vlgmr.msra.gmra.mxu0 %vm94_vm0, %v73_v5 }
  0x18   :  { %180 = vmatpush.bf16.msra.mxu1 %v269_v6 }
  0x1c   :  { %181 = vmatpush.bf16.msra.mxu1 %v268_v7 }
  0x20   :  { %182 = vmatpush.bf16.msra.mxu1 %v267_v8 }
  0x24   :  { %183 = vmatpush.bf16.msra.mxu1 %v266_v9 }
  0x28   :  { %184 = vmatpush.bf16.msra.mxu1 %v265_v10 }
  0x2c   :  { %185 = vmatpush.bf16.msra.mxu1 %v264_v11 }
  0x93   :  { %v107_v13 = vpop.f32.mrf.mxu0 }
  0x94   :  { %v108_v14 = vadd.f32 %v278_v12, %v107_v13 }
  0x96   :  { %v111_v15 = vmax.f32 %v108_v14, 0.0 }
  0x98   :  { %v113_v16 = vpack.c.bf16 %v111_v15, %v111_v15 }
  0x9a   :  { %186 = vmatmul.bf16.vlgmr.msra.gmra.mxu1 %v113_v16 }
  0x9b   :  { %v109_v17 = vpop.f32.mrf.mxu0 }
 0x117   :  { %v187_v19 = vpop.f32.mrf.mxu1 }
 0x118   :  { %v201_v20 = vadd.f32 %v279_v18, %v187_v19 }
 0x11a   :  { %202 = vst [vmem:[#allocation9] sm:$0xff] %v201_v20 }
 0x11b   :  { %213 = dma.vmem_to_hbm [thread:$0]  %s209_s12, 128, %s211_s15, [#allocation5]  }
 0x11f   :  { %v189_v21 = vpop.f32.mrf.mxu1 }
 0x120   :  { %380 = dma.done.wait [#allocation5], 128  }
 0x121   :  { %381 = vsyncadd [#allocation5], 4294967168 }
 0x122   :  { %218 = vsyncpa [#allocation4], 1 }
 0x123   :  { %219 = vsyncpa [#allocation7], 1 }
 0x124   :  { %220 = vsyncpa [#allocation5], 1 }

</bundles_post_ra>
